<compile_context>
chip_gen: v7x
topology: tpu7x:2x2x1
jax: 0.10.0
libtpu: 0.0.40
codegen_flags: <defaults>
</compile_context>

<pallas_src>
import jax
import jax.numpy as jnp
from jax.experimental import pallas as pl
from jax.experimental.pallas import tpu as pltpu


def _awsum_kernel(x_ref, wt_ref, b_ref, o_ref, acc_ref):
    k = pl.program_id(2)

    @pl.when(k == 0)
    def _():
        acc_ref[...] = jnp.zeros_like(acc_ref)

    x = x_ref[...].astype(jnp.float32)    # (tm, tk)
    w = wt_ref[...].astype(jnp.float32)   # (tk, tn)  -- already (K, N), no .T

    # RePU(n=2) split by sign so the K-reduction maps onto the MXU.
    xp2 = jnp.square(jnp.maximum(x, 0.0))
    xn2 = jnp.square(jnp.minimum(x, 0.0))   # == relu(-x)^2
    wp2 = jnp.square(jnp.maximum(w, 0.0))
    wn2 = jnp.square(jnp.minimum(w, 0.0))   # == relu(-w)^2

    acc_ref[...] += (
        jnp.dot(xp2, wp2, preferred_element_type=jnp.float32)
        + jnp.dot(xn2, wn2, preferred_element_type=jnp.float32)
    )

    @pl.when(k == pl.num_programs(2) - 1)
    def _():
        # bias: (1, tn) broadcast over the tm rows, added once in the epilogue.
        o_ref[...] = (acc_ref[...] + b_ref[...]).astype(o_ref.dtype)


def _round_up(v, m):
    return (v + m - 1) // m * m


def activated_weighted_sum(x, weight, bias, *, tm=256, tn=256, tk=512):
    """x: (B, D), weight: (O, D), bias: (O,) -> (B, O)."""
    B, D = x.shape
    O, D2 = weight.shape
    assert D == D2 and bias.shape == (O,)

    # Clamp tiles to the (padded) problem size, keeping (8, 128) alignment.
    tm = min(tm, _round_up(B, 8))
    tn = min(tn, _round_up(O, 128))
    tk = min(tk, _round_up(D, 128))

    Bp = _round_up(B, tm)
    Op = _round_up(O, tn)
    Dp = _round_up(D, tk)

    # Pre-transpose weight once (K-contracting, O lane-dense) and zero-pad.
    # Zero padding is exact: relu(0)^2 contributes nothing to the sum.
    x_p = jnp.zeros((Bp, Dp), x.dtype).at[:B, :D].set(x)
    wt_p = jnp.zeros((Dp, Op), weight.dtype).at[:D, :O].set(weight.T)
    b_p = jnp.zeros((1, Op), bias.dtype).at[0, :O].set(bias)

    grid = (Bp // tm, Op // tn, Dp // tk)

    out_p = pl.pallas_call(
        _awsum_kernel,
        out_shape=jax.ShapeDtypeStruct((Bp, Op), x.dtype),
        grid_spec=pltpu.PrefetchScalarGridSpec(
            num_scalar_prefetch=0,
            grid=grid,
            in_specs=[
                pl.BlockSpec((tm, tk), lambda i, j, k: (i, k)),   # x tile
                pl.BlockSpec((tk, tn), lambda i, j, k: (k, j)),   # W^T tile
                pl.BlockSpec((1, tn), lambda i, j, k: (0, j)),    # bias tile
            ],
            out_specs=pl.BlockSpec((tm, tn), lambda i, j, k: (i, j)),
            scratch_shapes=[pltpu.VMEM((tm, tn), jnp.float32)],
        ),
        compiler_params=pltpu.CompilerParams(
            dimension_semantics=("parallel", "parallel", "arbitrary"),
            vmem_limit_bytes=32 * 1024 * 1024,   # safe on v5e/v6e/v7x
        ),
    )(x_p, wt_p, b_p)

    return out_p[:B, :O]


if __name__ == "__main__":
    # Small shapes consistent with the module's forward.
    B, INPUT_DIM, OUTPUT_DIM = 4, 32, 16

    key = jax.random.PRNGKey(0)
    kx, kw = jax.random.split(key)
    x = jax.random.normal(kx, (B, INPUT_DIM), dtype=jnp.float32)
    # Parameter init matching the module: weight ~ randn, bias = zeros.
    weight = jax.random.normal(kw, (OUTPUT_DIM, INPUT_DIM), dtype=jnp.float32)
    bias = jnp.zeros((OUTPUT_DIM,), dtype=jnp.float32)

    out = activated_weighted_sum(x, weight, bias)
    out = jax.block_until_ready(out)

    # Pure-JAX reference of the PyTorch forward (broadcast / RePU / reduce).
    ref = jnp.sum(
        jnp.maximum(x[:, None, :] * weight[None, :, :], 0.0) ** 2, axis=2
    ) + bias[None, :]

    assert out.shape == (B, OUTPUT_DIM)
    assert jnp.allclose(out, ref, rtol=1e-4, atol=1e-4), (
        f"max abs err {jnp.max(jnp.abs(out - ref))}")

    print("KERNEL_OK")
</pallas_src>

<mosaic_0001>
module attributes {stable_mosaic.version = 11 : i64} {
  func.func @_awsum_kernel(%arg0: i32, %arg1: i32, %arg2: i32, %arg3: memref<8x128xf32, #tpu.memory_space<vmem>>, %arg4: memref<128x128xf32, #tpu.memory_space<vmem>>, %arg5: memref<1x128xf32, #tpu.memory_space<vmem>>, %arg6: memref<8x128xf32, #tpu.memory_space<vmem>>, %arg7: memref<8x128xf32, #tpu.memory_space<vmem>>) attributes {dimension_semantics = [#tpu.dimension_semantics<parallel>, #tpu.dimension_semantics<parallel>, #tpu.dimension_semantics<arbitrary>], iteration_bounds = array<i64: 1, 1, 1>, scalar_prefetch = 0 : i64, scratch_operands = 1 : i64, tpu.core_type = #tpu.core_type<tc>, window_params = [{transform_indices = @transform_0, window_bounds = array<i64: 8, 128>}, {transform_indices = @transform_1, window_bounds = array<i64: 128, 128>}, {transform_indices = @transform_2, window_bounds = array<i64: 1, 128>}, {transform_indices = @transform_3, window_bounds = array<i64: 8, 128>}]} {
    %c0_i32 = arith.constant 0 : i32
    %0 = arith.cmpi eq, %arg2, %c0_i32 : i32
    %1 = arith.extui %0 : i1 to i32
    %c0_i32_0 = arith.constant 0 : i32
    %2 = arith.cmpi ne, %1, %c0_i32_0 : i32
    scf.if %2 {
      %cst_15 = arith.constant 0.000000e+00 : f32
      %26 = vector.broadcast %cst_15 : f32 to vector<8x128xf32>
      %c0_16 = arith.constant 0 : index
      %c0_17 = arith.constant 0 : index
      %27 = vector.load %arg7[%c0_16, %c0_17] : memref<8x128xf32, #tpu.memory_space<vmem>>, vector<8x128xf32>
      tpu.vector_store %arg7[%c0_16, %c0_17], %26 {strides = array<i32>} : memref<8x128xf32, #tpu.memory_space<vmem>>, vector<8x128xf32>,
    } else {
    }
    %c0 = arith.constant 0 : index
    %c0_1 = arith.constant 0 : index
    %3 = vector.load %arg3[%c0, %c0_1] : memref<8x128xf32, #tpu.memory_space<vmem>>, vector<8x128xf32>
    %c0_2 = arith.constant 0 : index
    %c0_3 = arith.constant 0 : index
    %4 = vector.load %arg4[%c0_2, %c0_3] : memref<128x128xf32, #tpu.memory_space<vmem>>, vector<128x128xf32>
    %cst = arith.constant 0.000000e+00 : f32
    %5 = vector.broadcast %cst : f32 to vector<8x128xf32>
    %6 = arith.maximumf %3, %5 : vector<8x128xf32>
    %7 = arith.mulf %6, %6 : vector<8x128xf32>
    %cst_4 = arith.constant 0.000000e+00 : f32
    %8 = vector.broadcast %cst_4 : f32 to vector<8x128xf32>
    %9 = arith.minimumf %3, %8 : vector<8x128xf32>
    %10 = arith.mulf %9, %9 : vector<8x128xf32>
    %cst_5 = arith.constant 0.000000e+00 : f32
    %11 = vector.broadcast %cst_5 : f32 to vector<128x128xf32>
    %12 = arith.maximumf %4, %11 : vector<128x128xf32>
    %13 = arith.mulf %12, %12 : vector<128x128xf32>
    %cst_6 = arith.constant 0.000000e+00 : f32
    %14 = vector.broadcast %cst_6 : f32 to vector<128x128xf32>
    %15 = arith.minimumf %4, %14 : vector<128x128xf32>
    %16 = arith.mulf %15, %15 : vector<128x128xf32>
    %c0_7 = arith.constant 0 : index
    %c0_8 = arith.constant 0 : index
    %17 = vector.load %arg7[%c0_7, %c0_8] : memref<8x128xf32, #tpu.memory_space<vmem>>, vector<8x128xf32>
    %cst_9 = arith.constant dense<0.000000e+00> : vector<8x128xf32>
    %18 = tpu.matmul %7, %13, %cst_9 {dimension_numbers = #tpu.dot_dimension_numbers<[1], [0], [0], [1], [0, 0, 1, 1], [], []>} : vector<8x128xf32>, vector<128x128xf32>, vector<8x128xf32> -> vector<8x128xf32>
    %cst_10 = arith.constant dense<0.000000e+00> : vector<8x128xf32>
    %19 = tpu.matmul %10, %16, %cst_10 {dimension_numbers = #tpu.dot_dimension_numbers<[1], [0], [0], [1], [0, 0, 1, 1], [], []>} : vector<8x128xf32>, vector<128x128xf32>, vector<8x128xf32> -> vector<8x128xf32>
    %20 = arith.addf %18, %19 : vector<8x128xf32>
    %21 = arith.addf %17, %20 : vector<8x128xf32>
    %c0_11 = arith.constant 0 : index
    %c0_12 = arith.constant 0 : index
    %22 = vector.load %arg7[%c0_11, %c0_12] : memref<8x128xf32, #tpu.memory_space<vmem>>, vector<8x128xf32>
    tpu.vector_store %arg7[%c0_11, %c0_12], %21 {strides = array<i32>} : memref<8x128xf32, #tpu.memory_space<vmem>>, vector<8x128xf32>,
    %c0_i32_13 = arith.constant 0 : i32
    %23 = arith.cmpi eq, %arg2, %c0_i32_13 : i32
    %24 = arith.extui %23 : i1 to i32
    %c0_i32_14 = arith.constant 0 : i32
    %25 = arith.cmpi ne, %24, %c0_i32_14 : i32
    scf.if %25 {
      %c0_15 = arith.constant 0 : index
      %c0_16 = arith.constant 0 : index
      %26 = vector.load %arg7[%c0_15, %c0_16] : memref<8x128xf32, #tpu.memory_space<vmem>>, vector<8x128xf32>
      %c0_17 = arith.constant 0 : index
      %c0_18 = arith.constant 0 : index
      %27 = vector.load %arg5[%c0_17, %c0_18] : memref<1x128xf32, #tpu.memory_space<vmem>>, vector<1x128xf32>
      %28 = vector.broadcast %27 : vector<1x128xf32> to vector<8x128xf32>
      %29 = arith.addf %26, %28 : vector<8x128xf32>
      %c0_19 = arith.constant 0 : index
      %c0_20 = arith.constant 0 : index
      %30 = vector.load %arg6[%c0_19, %c0_20] : memref<8x128xf32, #tpu.memory_space<vmem>>, vector<8x128xf32>
      tpu.vector_store %arg6[%c0_19, %c0_20], %29 {strides = array<i32>} : memref<8x128xf32, #tpu.memory_space<vmem>>, vector<8x128xf32>,
    } else {
    }
    return
  }
  func.func @transform_0(%arg0: i32, %arg1: i32, %arg2: i32) -> (i32, i32) {
    %c0_i32 = arith.constant 0 : i32
    return %arg0, %arg2 : i32, i32
  }
  func.func @transform_1(%arg0: i32, %arg1: i32, %arg2: i32) -> (i32, i32) {
    %c0_i32 = arith.constant 0 : i32
    return %arg2, %arg1 : i32, i32
  }
  func.func @transform_2(%arg0: i32, %arg1: i32, %arg2: i32) -> (i32, i32) {
    %c0_i32 = arith.constant 0 : i32
    %c0_i32_0 = arith.constant 0 : i32
    return %c0_i32, %arg1 : i32, i32
  }
  func.func @transform_3(%arg0: i32, %arg1: i32, %arg2: i32) -> (i32, i32) {
    %c0_i32 = arith.constant 0 : i32
    return %arg0, %arg1 : i32, i32
  }
}

</mosaic_0001>

<bundles_post_ra>
// kernel: tpu_custom_call.1
= control target key start
LH: loop header
LB: loop body
LE: loop exit
PB: predicated region body
PF: predicated region fallthrough
CT: control target
= control target key end

     0   :  { %8 = vsyncpa [#allocation4], 0  ;;  %s626_s0 = inlined_call_operand.hbm [shape: f32[8,128], index: 0, kind: input, shape index: {}]   ;;  %s627_s1 = inlined_call_operand.hbm [shape: f32[128,128], index: 1, kind: input, shape index: {}]   ;;  %s628_s2 = inlined_call_operand.vmem [shape: f32[1,128], index: 2, kind: input, shape index: {}]   ;;  %s629_s3 = inlined_call_operand.hbm [shape: f32[8,128], index: 3, kind: output, shape index: {}]  }
   0x1   :  { %9 = vsyncpa [#allocation7], 0 }
   0x2   :  { %10 = vsyncpa [#allocation5], 0  ;;  %s536_s12 = smov [#allocation3]   ;;  %s537_s14 = smov [#allocation6]  }
   0x3   :  { %s17_s13 = sshll.u32 %s536_s12, 4  ;;  %s26_s15 = sshll.u32 %s537_s14, 4  ;;  %s18_s13 = int_to_ptr.vmem [resolvable:$true] %s17_s13  ;;  %s564_s15 = int_to_ptr.vmem [resolvable:$true] %s26_s15 }
   0x4   :  { %s464_s18 = scalar_lea.hbm %s626_s0, 128 }
   0x5   :  { %p465_p0 = scmp.ne.s32.totalorder %s626_s0, %s464_s18  ;;  %p468_p1 = scmp.lt.u32.totalorder %s464_s18, %s626_s0 }
   0x7   :  { %p470_p2 = pnand %p468_p1, %p465_p0 }
   0x9   :  { %473 = shalt.err (!%p470_p2)
}
   0xa   :  { %s474_s23 = scalar_lea.vmem %s18_s13, 128  ;;  %p479_p4 = scmp.lt.s32.totalorder %s18_s13, %s18_s13 }
   0xb   :  { %p475_p3 = scmp.ne.s32.totalorder %s18_s13, %s474_s23  ;;  %p480_p5 = scmp.lt.s32.totalorder %s474_s23, %s474_s23 }
   0xd   :  { %p481_p6 = por %p480_p5, %p479_p4 }
   0xf   :  { %p482_p7 = pnand %p481_p6, %p475_p3 }
  0x11   :  { %485 = shalt.err (!%p482_p7)
}
  0x12   :  { %20 = dma.hbm_to_vmem [thread:$0]  %s626_s0, 128, %s18_s13, [#allocation4]  }
  0x13   :  { %s486_s28 = scalar_lea.hbm %s627_s1, 2048 }
  0x14   :  { %p487_p8 = scmp.ne.s32.totalorder %s627_s1, %s486_s28  ;;  %p490_p9 = scmp.lt.u32.totalorder %s486_s28, %s627_s1 }
  0x16   :  { %p492_p10 = pnand %p490_p9, %p487_p8 }
  0x18   :  { %495 = shalt.err (!%p492_p10)
}
  0x19   :  { %s496_s6 = scalar_lea.vmem %s564_s15, 2048  ;;  %p501_p12 = scmp.lt.s32.totalorder %s564_s15, %s564_s15 }
  0x1a   :  { %p497_p11 = scmp.ne.s32.totalorder %s564_s15, %s496_s6  ;;  %p502_p13 = scmp.lt.s32.totalorder %s496_s6, %s496_s6 }
  0x1c   :  { %p503_p0 = por %p502_p13, %p501_p12 }
  0x1e   :  { %p504_p1 = pnand %p503_p0, %p497_p11 }
  0x20   :  { %507 = shalt.err (!%p504_p1)
}
  0x21   :  { %s538_s0 = smov 128   ;;  %s539_s7 = smov 8  }
  0x22   :  { %32 = dma.hbm_to_vmem [thread:$0]  %s627_s1, 2048, %s564_s15, [#allocation7], %s538_s0, %s538_s0, %s539_s7  }
  0x23   :  { %530 = dma.done.wait [#allocation4], 128  }
  0x24   :  { %531 = vsyncadd [#allocation4], 4294967168 }
  0x25   :  { %532 = dma.done.wait [#allocation7], 2048  }
  0x26   :  { %533 = vsyncadd [#allocation7], 4294965248  ;;  %v540_v0 = vmov 0.0|0.0   ;;  %vm541_vm0 = vmmov 0   ;;  %v542_v1 = vmov 0.0   ;;  %v47_v2 = vld [vmem:[#allocation6] sm:$0xff] }
  0x27   :  { %408 = vmatprep.subr.bf16.mxu0 %v540_v0  ;;  %432 = vmatprep.subr.bf16.mxu1 %v540_v0  ;;  %v48_v3 = vld [vmem:[#allocation6 + $0x8] sm:$0xff]  ;;  %v49_v4 = vld [vmem:[#allocation6 + $0x10] sm:$0xff]  ;;  %v99_v5 = vmin.f32 %v47_v2, 0.0  ;;  %v67_v7 = vmax.f32 %v47_v2, 0.0  ;;  %v50_v9 = vld [vmem:[#allocation6 + $0x18] sm:$0xff]  ;;  %s543_s11 = smov [#allocation8]  }
  0x28   :  { %370 = vmatprep.mubr.msk.f32.mxu0 %vm541_vm0, %v542_v1  ;;  %405 = vmatprep.mubr.msk.f32.mxu1 %vm541_vm0, %v542_v1  ;;  %v100_v6 = vmin.f32 %v48_v3, 0.0  ;;  %v68_v8 = vmax.f32 %v48_v3, 0.0  ;;  %v101_v10 = vmin.f32 %v49_v4, 0.0  ;;  %v102_v11 = vmin.f32 %v50_v9, 0.0  ;;  %v51_v14 = vld [vmem:[#allocation6 + $0x20] sm:$0xff]  ;;  %v52_v15 = vld [vmem:[#allocation6 + $0x28] sm:$0xff] }
  0x29   :  { %v69_v12 = vmax.f32 %v49_v4, 0.0  ;;  %v70_v13 = vmax.f32 %v50_v9, 0.0  ;;  %v115_v16 = vmul.f32 %v99_v5, %v99_v5  ;;  %v83_v18 = vmul.f32 %v67_v7, %v67_v7  ;;  %v53_v24 = vld [vmem:[#allocation6 + $0x30] sm:$0xff]  ;;  %v54_v25 = vld [vmem:[#allocation6 + $0x38] sm:$0xff]  ;;  %v55_v38 = vld [vmem:[#allocation6 + $0x40] sm:$0xff]  ;;  %s293_s12 = sshll.u32 %s543_s11, 4  ;;  %s294_s12 = int_to_ptr.vmem [resolvable:$true] %s293_s12 }
  0x2a   :  { %v116_v17 = vmul.f32 %v100_v6, %v100_v6  ;;  %v84_v19 = vmul.f32 %v68_v8, %v68_v8  ;;  %v117_v20 = vmul.f32 %v101_v10, %v101_v10  ;;  %v118_v21 = vmul.f32 %v102_v11, %v102_v11  ;;  %v56_v43 = vld [vmem:[#allocation6 + $0x48] sm:$0xff]  ;;  %v57_v50 = vld [vmem:[#allocation6 + $0x50] sm:$0xff]  ;;  %v58_v51 = vld [vmem:[#allocation6 + $0x58] sm:$0xff]  ;;  %s508_s13 = scalar_lea.vmem %s294_s12, 128  ;;  %p513_p3 = scmp.lt.s32.totalorder %s294_s12, %s294_s12 }
  0x2b   :  { %v85_v22 = vmul.f32 %v69_v12, %v69_v12  ;;  %v86_v23 = vmul.f32 %v70_v13, %v70_v13  ;;  %v103_v28 = vmin.f32 %v51_v14, 0.0  ;;  %v104_v29 = vmin.f32 %v52_v15, 0.0  ;;  %v59_v63 = vld [vmem:[#allocation6 + $0x60] sm:$0xff]  ;;  %v60_v4 = vld [vmem:[#allocation6 + $0x68] sm:$0xff]  ;;  %p509_p2 = scmp.ne.s32.totalorder %s294_s12, %s508_s13  ;;  %p514_p4 = scmp.lt.s32.totalorder %s508_s13, %s508_s13 }
  0x2c   :  { %v409_v26 = vpack.c.bf16 %v116_v17, %v115_v16  ;;  %v433_v27 = vpack.c.bf16 %v84_v19, %v83_v18  ;;  %v412_v30 = vpack.c.bf16 %v118_v21, %v117_v20  ;;  %v71_v32 = vmax.f32 %v51_v14, 0.0  ;;  %v62_v16 = vld [vmem:[#allocation6 + $0x78] sm:$0xff] }
  0x2d   :  { %v436_v31 = vpack.c.bf16 %v86_v23, %v85_v22  ;;  %v72_v33 = vmax.f32 %v52_v15, 0.0  ;;  %v119_v34 = vmul.f32 %v103_v28, %v103_v28  ;;  %v120_v35 = vmul.f32 %v104_v29, %v104_v29  ;;  %v61_v15 = vld [vmem:[#allocation6 + $0x70] sm:$0xff]  ;;  %p515_p5 = por %p514_p4, %p513_p3 }
  0x2e   :  { %410 = vmatpush3.bf16.msra.mxu0 %v409_v26  ;;  %434 = vmatpush3.bf16.msra.mxu1 %v433_v27  ;;  %v105_v36 = vmin.f32 %v53_v24, 0.0  ;;  %v106_v37 = vmin.f32 %v54_v25, 0.0  ;;  %v87_v39 = vmul.f32 %v71_v32, %v71_v32  ;;  %v73_v41 = vmax.f32 %v53_v24, 0.0 }
  0x2f   :  { %411 = vmatprep.subr.bf16.mxu0 %v540_v0  ;;  %435 = vmatprep.subr.bf16.mxu1 %v540_v0  ;;  %v88_v40 = vmul.f32 %v72_v33, %v72_v33  ;;  %v74_v42 = vmax.f32 %v54_v25, 0.0  ;;  %v415_v46 = vpack.c.bf16 %v120_v35, %v119_v34  ;;  %v107_v49 = vmin.f32 %v55_v38, 0.0  ;;  %v46_v33 = vld [vmem:[#allocation3] sm:$0xff]  ;;  %p516_p6 = pnand %p515_p5, %p509_p2 }
  0x30   :  { %v121_v44 = vmul.f32 %v105_v36, %v105_v36  ;;  %v122_v45 = vmul.f32 %v106_v37, %v106_v37  ;;  %v89_v47 = vmul.f32 %v73_v41, %v73_v41  ;;  %v108_v53 = vmin.f32 %v56_v43, 0.0 }
  0x31   :  { %v90_v48 = vmul.f32 %v74_v42, %v74_v42  ;;  %v439_v52 = vpack.c.bf16 %v88_v40, %v87_v39  ;;  %v75_v54 = vmax.f32 %v55_v38, 0.0  ;;  %v76_v55 = vmax.f32 %v56_v43, 0.0  ;;  %v303_v42 = vld [vmem:[%s628_s2] ss:$0 sm:$0xff] }
  0x32   :  { %413 = vmatpush3.bf16.msra.mxu0 %v412_v30  ;;  %437 = vmatpush3.bf16.msra.mxu1 %v436_v31  ;;  %v418_v56 = vpack.c.bf16 %v122_v45, %v121_v44  ;;  %v109_v57 = vmin.f32 %v57_v50, 0.0  ;;  %v110_v58 = vmin.f32 %v58_v51, 0.0  ;;  %v123_v60 = vmul.f32 %v107_v49, %v107_v49 }
  0x33   :  { %414 = vmatprep.subr.bf16.mxu0 %v540_v0  ;;  %438 = vmatprep.subr.bf16.mxu1 %v540_v0  ;;  %v442_v59 = vpack.c.bf16 %v90_v48, %v89_v47  ;;  %v77_v61 = vmax.f32 %v57_v50, 0.0  ;;  %v78_v62 = vmax.f32 %v58_v51, 0.0  ;;  %v124_v1 = vmul.f32 %v108_v53, %v108_v53 }
  0x34   :  { %v91_v2 = vmul.f32 %v75_v54, %v75_v54  ;;  %v92_v3 = vmul.f32 %v76_v55, %v76_v55  ;;  %v125_v5 = vmul.f32 %v109_v57, %v109_v57  ;;  %v126_v6 = vmul.f32 %v110_v58, %v110_v58 }
  0x35   :  { %v111_v7 = vmin.f32 %v59_v63, 0.0  ;;  %v93_v8 = vmul.f32 %v77_v61, %v77_v61  ;;  %v94_v9 = vmul.f32 %v78_v62, %v78_v62  ;;  %v112_v10 = vmin.f32 %v60_v4, 0.0 }
  0x36   :  { %416 = vmatpush3.bf16.msra.mxu0 %v415_v46  ;;  %440 = vmatpush3.bf16.msra.mxu1 %v439_v52  ;;  %v421_v11 = vpack.c.bf16 %v124_v1, %v123_v60  ;;  %v445_v12 = vpack.c.bf16 %v92_v3, %v91_v2  ;;  %v79_v13 = vmax.f32 %v59_v63, 0.0  ;;  %v80_v14 = vmax.f32 %v60_v4, 0.0 }
  0x37   :  { %417 = vmatprep.subr.bf16.mxu0 %v540_v0  ;;  %441 = vmatprep.subr.bf16.mxu1 %v540_v0  ;;  %v424_v17 = vpack.c.bf16 %v126_v6, %v125_v5  ;;  %v127_v18 = vmul.f32 %v111_v7, %v111_v7  ;;  %v448_v19 = vpack.c.bf16 %v94_v9, %v93_v8  ;;  %v113_v21 = vmin.f32 %v61_v15, 0.0 }
  0x38   :  { %v128_v20 = vmul.f32 %v112_v10, %v112_v10  ;;  %v114_v22 = vmin.f32 %v62_v16, 0.0  ;;  %v95_v23 = vmul.f32 %v79_v13, %v79_v13  ;;  %v96_v24 = vmul.f32 %v80_v14, %v80_v14 }
  0x39   :  { %v81_v25 = vmax.f32 %v61_v15, 0.0  ;;  %v82_v26 = vmax.f32 %v62_v16, 0.0  ;;  %v129_v28 = vmul.f32 %v113_v21, %v113_v21  ;;  %v65_v34 = vmin.f32 %v46_v33, 0.0 }
  0x3a   :  { %419 = vmatpush3.bf16.msra.mxu0 %v418_v56  ;;  %443 = vmatpush3.bf16.msra.mxu1 %v442_v59  ;;  %v427_v27 = vpack.c.bf16 %v128_v20, %v127_v18  ;;  %v130_v29 = vmul.f32 %v114_v22, %v114_v22  ;;  %v451_v30 = vpack.c.bf16 %v96_v24, %v95_v23  ;;  %v63_v35 = vmax.f32 %v46_v33, 0.0 }
  0x3b   :  { %420 = vmatprep.subr.bf16.mxu0 %v540_v0  ;;  %444 = vmatprep.subr.bf16.mxu1 %v540_v0  ;;  %v97_v31 = vmul.f32 %v81_v25, %v81_v25  ;;  %v98_v32 = vmul.f32 %v82_v26, %v82_v26  ;;  %v66_v38 = vmul.f32 %v65_v34, %v65_v34 }
  0x3c   :  { %v430_v36 = vpack.c.bf16 %v130_v29, %v129_v28  ;;  %v64_v39 = vmul.f32 %v63_v35, %v63_v35 }
  0x3d   :  { %v454_v37 = vpack.c.bf16 %v98_v32, %v97_v31 }
  0x3e   :  { %422 = vmatpush3.bf16.msra.mxu0 %v421_v11  ;;  %446 = vmatpush3.bf16.msra.mxu1 %v445_v12 }
  0x3f   :  { %423 = vmatprep.subr.bf16.mxu0 %v540_v0  ;;  %447 = vmatprep.subr.bf16.mxu1 %v540_v0 }
  0x42   :  { %425 = vmatpush3.bf16.msra.mxu0 %v424_v17  ;;  %449 = vmatpush3.bf16.msra.mxu1 %v448_v19 }
  0x43   :  { %426 = vmatprep.subr.bf16.mxu0 %v540_v0  ;;  %450 = vmatprep.subr.bf16.mxu1 %v540_v0 }
  0x46   :  { %428 = vmatpush3.bf16.msra.mxu0 %v427_v27  ;;  %452 = vmatpush3.bf16.msra.mxu1 %v451_v30 }
  0x47   :  { %429 = vmatprep.subr.bf16.mxu0 %v540_v0  ;;  %453 = vmatprep.subr.bf16.mxu1 %v540_v0 }
  0x4a   :  { %431 = vmatpush3.bf16.msra.mxu0 %v430_v36  ;;  %455 = vmatpush3.bf16.msra.mxu1 %v454_v37 }
  0x4d   :  { %371 = vmatmul.mubr.f32.vlgmr.msra.gmra.mrb[0].mxu0 %v66_v38  ;;  %406 = vmatmul.mubr.f32.vlgmr.msra.gmra.mrb[0].mxu1 %v64_v39 }
 0x120   :  { %v198_v40 = vpop.f32.mrb[0].mxu0  ;;  %v268_v41 = vpop.f32.mrb[0].mxu1 }
 0x121   :  { %v269_v43 = vadd.f32 %v268_v41, %v198_v40  ;;  %v372_v44 = vpop.f32.mrb[1].mxu0  ;;  %v407_v45 = vpop.f32.mrb[1].mxu1 }
 0x123   :  { %v285_v46 = vadd.f32 %v303_v42, %v269_v43 }
 0x125   :  { %286 = vst [vmem:[#allocation8] sm:$0xff] %v285_v46 }
 0x126   :  { %519 = shalt.err (!%p516_p6)
}
 0x127   :  { %s520_s16 = scalar_lea.hbm %s629_s3, 128 }
 0x128   :  { %p521_p7 = scmp.ne.s32.totalorder %s629_s3, %s520_s16  ;;  %p524_p8 = scmp.lt.u32.totalorder %s520_s16, %s629_s3 }
 0x12a   :  { %p526_p9 = pnand %p524_p8, %p521_p7 }
 0x12c   :  { %529 = shalt.err (!%p526_p9)
}
 0x12d   :  { %296 = dma.vmem_to_hbm [thread:$0]  %s294_s12, 128, %s629_s3, [#allocation5]  }
 0x12e   :  { %534 = dma.done.wait [#allocation5], 128  }
 0x12f   :  { %535 = vsyncadd [#allocation5], 4294967168 }
 0x130   :  { %300 = vsyncpa [#allocation4], 1 }
 0x131   :  { %301 = vsyncpa [#allocation7], 1 }
 0x132   :  { %302 = vsyncpa [#allocation5], 1 }

</bundles_post_ra>
